<compile_context>
chip_gen: v5e
topology: v5e:2x2
jax: 0.10.0
libtpu: 0.0.40
codegen_flags: <defaults>
</compile_context>

<pallas_src>
import jax
import jax.numpy as jnp
from jax.experimental import pallas as pl
from jax.experimental.pallas import tpu as pltpu


def _round_up(x, m):
    return (x + m - 1) // m * m


def _cdiv(a, b):
    return -(-a // b)


def _mlp_kernel(x_ref, w1_ref, b1_ref, w2_ref, b2_ref, o_ref):
    # Layer 1: MXU matmul, f32 accumulation; bias add + ReLU on the VPU.
    h = jnp.dot(x_ref[...], w1_ref[...], preferred_element_type=jnp.float32)
    h = jnp.maximum(h + b1_ref[...], 0.0)
    # Layer 2: straight to the true-width (tm, out_dim) output block.
    out = jnp.dot(h, w2_ref[...], preferred_element_type=jnp.float32)
    o_ref[...] = (out + b2_ref[...]).astype(o_ref.dtype)


def discriminator_forward(x, w1, b1, w2, b2, *, tm=None, core_parallel=False):
    """Forward of Linear(in->hid) -> ReLU -> Linear(hid->out).

    x:  [N, in_dim]   f32
    w1: [in_dim, hid] f32  (pre-transposed: forward computes x @ W + b)
    b1: [1, hid] (or [hid]) f32
    w2: [hid, out]    f32
    b2: [1, out] (or [out]) f32
    """
    n, in_dim = x.shape
    hid = w1.shape[1]
    out_dim = w2.shape[1]
    b1 = b1.reshape(1, hid)
    b2 = b2.reshape(1, out_dim)

    # ---- batch tiling -------------------------------------------------------
    # Pad rows only to the 8-row sublane granularity, then balance equal-size
    # tiles over the grid so padding never exceeds ~8 rows per grid step.
    n_pad = _round_up(max(n, 8), 8)
    if tm is None:
        # Single tile for batches up to 2048 rows (removes per-step pipeline
        # overhead); beyond that tile at 2048 rows.  VMEM at tm=2048 is
        # ~4 MiB (lane-padded x + out tiles, double-buffered) — far below the
        # scoped-VMEM default on v5e/v6e/v7x, so no vmem_limit override.
        tm = n_pad if n_pad <= 2048 else 2048
    tm = _round_up(min(tm, n_pad), 8)
    grid_n = _cdiv(n_pad, tm)
    if core_parallel:
        # v7x has 2 TensorCores per chip: give CORE_PARALLEL an even number of
        # equal grid steps so the batch actually splits across both cores.
        grid_n = _round_up(max(grid_n, 2), 2)
    tm = _round_up(_cdiv(n_pad, grid_n), 8)
    n_pad = tm * grid_n

    if n_pad != n:
        x = jnp.pad(x, ((0, n_pad - n), (0, 0)))

    flops = 2 * n_pad * (in_dim * hid + hid * out_dim)
    bytes_accessed = 4 * (n_pad * in_dim + in_dim * hid + hid
                          + hid * out_dim + out_dim + n_pad * out_dim)

    dim_sem = (pltpu.CORE_PARALLEL,) if core_parallel else ("arbitrary",)

    out = pl.pallas_call(
        _mlp_kernel,
        out_shape=jax.ShapeDtypeStruct((n_pad, out_dim), jnp.float32),
        grid_spec=pltpu.PrefetchScalarGridSpec(
            num_scalar_prefetch=0,
            grid=(grid_n,),
            in_specs=[
                # x tiles stream along the batch grid axis (pipelined DMA).
                pl.BlockSpec((tm, in_dim), lambda i: (i, 0)),
                # Weights / biases: constant index_map -> fetched once, VMEM-resident.
                pl.BlockSpec((in_dim, hid), lambda i: (0, 0)),
                pl.BlockSpec((1, hid), lambda i: (0, 0)),
                pl.BlockSpec((hid, out_dim), lambda i: (0, 0)),
                pl.BlockSpec((1, out_dim), lambda i: (0, 0)),
            ],
            # True-width output block: out_dim equals the full last dim, so no
            # lane padding and no fake HBM writeback.
            out_specs=pl.BlockSpec((tm, out_dim), lambda i: (i, 0)),
        ),
        compiler_params=pltpu.CompilerParams(dimension_semantics=dim_sem),
        cost_estimate=pl.CostEstimate(
            flops=flops, transcendentals=0, bytes_accessed=bytes_accessed),
    )(x, w1, b1, w2, b2)

    # Drop batch padding only (no column slice needed anymore).
    return out[:n]


def init_discriminator_params(key, input_dim, hidden_dim, output_dim, dtype=jnp.float32):
    """Deterministic init mirroring nn.Linear's uniform(-1/sqrt(fan_in), 1/sqrt(fan_in)).

    Weights are returned pre-transposed to [in, out] and biases as [1, dim] so the
    forward pass needs zero per-call layout prep.
    """
    k1, k2, k3, k4 = jax.random.split(key, 4)
    lim1 = 1.0 / jnp.sqrt(jnp.array(input_dim, dtype))
    lim2 = 1.0 / jnp.sqrt(jnp.array(hidden_dim, dtype))
    w1 = jax.random.uniform(k1, (input_dim, hidden_dim), dtype, -lim1, lim1)
    b1 = jax.random.uniform(k2, (1, hidden_dim), dtype, -lim1, lim1)
    w2 = jax.random.uniform(k3, (hidden_dim, output_dim), dtype, -lim2, lim2)
    b2 = jax.random.uniform(k4, (1, output_dim), dtype, -lim2, lim2)
    return w1, b1, w2, b2


if __name__ == "__main__":
    # Discriminator(input_dim=16, hidden_dim=32, output_dim=8).
    input_dim, hidden_dim, output_dim = 16, 32, 8

    key = jax.random.PRNGKey(0)
    kp, kx1, kx2 = jax.random.split(key, 3)
    w1, b1, w2, b2 = init_discriminator_params(kp, input_dim, hidden_dim, output_dim)

    fwd = jax.jit(discriminator_forward)

    # Two batch sizes: one sublane-aligned, one exercising the 8-row pad path.
    for batch, kx in ((512, kx1), (77, kx2)):
        x = jax.random.normal(kx, (batch, input_dim), jnp.float32)
        out = jax.block_until_ready(fwd(x, w1, b1, w2, b2))
        assert out.shape == (batch, output_dim)
        assert bool(jnp.all(jnp.isfinite(out)))

        # Pure f32 reference (same math as the PyTorch module).
        ref = jnp.maximum(x @ w1 + b1, 0.0) @ w2 + b2
        assert jnp.allclose(out, ref, atol=2e-2, rtol=2e-2), (
            batch, float(jnp.max(jnp.abs(out - ref))))

    print("KERNEL_OK")
</pallas_src>

<mosaic_0001>
module attributes {stable_mosaic.version = 11 : i64} {
  func.func @_mlp_kernel(%arg0: i32, %arg1: memref<512x16xf32, #tpu.memory_space<vmem>>, %arg2: memref<16x32xf32, #tpu.memory_space<vmem>>, %arg3: memref<1x32xf32, #tpu.memory_space<vmem>>, %arg4: memref<32x8xf32, #tpu.memory_space<vmem>>, %arg5: memref<1x8xf32, #tpu.memory_space<vmem>>, %arg6: memref<512x8xf32, #tpu.memory_space<vmem>>) attributes {dimension_semantics = [#tpu.dimension_semantics<arbitrary>], iteration_bounds = array<i64: 1>, scalar_prefetch = 0 : i64, scratch_operands = 0 : i64, tpu.core_type = #tpu.core_type<tc>, window_params = [{transform_indices = @transform_0, window_bounds = array<i64: 512, 16>}, {pipeline_mode = #tpu.pipeline_mode<synchronous>, transform_indices = @transform_1, window_bounds = array<i64: 16, 32>}, {pipeline_mode = #tpu.pipeline_mode<synchronous>, transform_indices = @transform_2, window_bounds = array<i64: 1, 32>}, {pipeline_mode = #tpu.pipeline_mode<synchronous>, transform_indices = @transform_3, window_bounds = array<i64: 32, 8>}, {pipeline_mode = #tpu.pipeline_mode<synchronous>, transform_indices = @transform_4, window_bounds = array<i64: 1, 8>}, {transform_indices = @transform_5, window_bounds = array<i64: 512, 8>}]} {
    %c0 = arith.constant 0 : index
    %c0_0 = arith.constant 0 : index
    %0 = vector.load %arg1[%c0, %c0_0] : memref<512x16xf32, #tpu.memory_space<vmem>>, vector<512x16xf32>
    %c0_1 = arith.constant 0 : index
    %c0_2 = arith.constant 0 : index
    %1 = vector.load %arg2[%c0_1, %c0_2] : memref<16x32xf32, #tpu.memory_space<vmem>>, vector<16x32xf32>
    %cst = arith.constant dense<0.000000e+00> : vector<512x32xf32>
    %2 = tpu.matmul %0, %1, %cst {dimension_numbers = #tpu.dot_dimension_numbers<[1], [0], [0], [1], [0, 0, 1, 1], [], []>} : vector<512x16xf32>, vector<16x32xf32>, vector<512x32xf32> -> vector<512x32xf32>
    %c0_3 = arith.constant 0 : index
    %c0_4 = arith.constant 0 : index
    %3 = vector.load %arg3[%c0_3, %c0_4] : memref<1x32xf32, #tpu.memory_space<vmem>>, vector<1x32xf32>
    %4 = vector.broadcast %3 : vector<1x32xf32> to vector<512x32xf32>
    %5 = arith.addf %2, %4 : vector<512x32xf32>
    %cst_5 = arith.constant 0.000000e+00 : f32
    %6 = vector.broadcast %cst_5 : f32 to vector<512x32xf32>
    %7 = arith.maximumf %5, %6 : vector<512x32xf32>
    %c0_6 = arith.constant 0 : index
    %c0_7 = arith.constant 0 : index
    %8 = vector.load %arg4[%c0_6, %c0_7] : memref<32x8xf32, #tpu.memory_space<vmem>>, vector<32x8xf32>
    %cst_8 = arith.constant dense<0.000000e+00> : vector<512x8xf32>
    %9 = tpu.matmul %7, %8, %cst_8 {dimension_numbers = #tpu.dot_dimension_numbers<[1], [0], [0], [1], [0, 0, 1, 1], [], []>} : vector<512x32xf32>, vector<32x8xf32>, vector<512x8xf32> -> vector<512x8xf32>
    %c0_9 = arith.constant 0 : index
    %c0_10 = arith.constant 0 : index
    %10 = vector.load %arg5[%c0_9, %c0_10] : memref<1x8xf32, #tpu.memory_space<vmem>>, vector<1x8xf32>
    %11 = vector.broadcast %10 : vector<1x8xf32> to vector<512x8xf32>
    %12 = arith.addf %9, %11 : vector<512x8xf32>
    %c0_11 = arith.constant 0 : index
    %c0_12 = arith.constant 0 : index
    %13 = vector.load %arg6[%c0_11, %c0_12] : memref<512x8xf32, #tpu.memory_space<vmem>>, vector<512x8xf32>
    tpu.vector_store %arg6[%c0_11, %c0_12], %12 {strides = array<i32>} : memref<512x8xf32, #tpu.memory_space<vmem>>, vector<512x8xf32>,
    return
  }
  func.func @transform_0(%arg0: i32) -> (i32, i32) {
    %c0_i32 = arith.constant 0 : i32
    %c0_i32_0 = arith.constant 0 : i32
    return %arg0, %c0_i32 : i32, i32
  }
  func.func @transform_1(%arg0: i32) -> (i32, i32) {
    %c0_i32 = arith.constant 0 : i32
    %c0_i32_0 = arith.constant 0 : i32
    %c0_i32_1 = arith.constant 0 : i32
    return %c0_i32, %c0_i32_0 : i32, i32
  }
  func.func @transform_2(%arg0: i32) -> (i32, i32) {
    %c0_i32 = arith.constant 0 : i32
    %c0_i32_0 = arith.constant 0 : i32
    %c0_i32_1 = arith.constant 0 : i32
    return %c0_i32, %c0_i32_0 : i32, i32
  }
  func.func @transform_3(%arg0: i32) -> (i32, i32) {
    %c0_i32 = arith.constant 0 : i32
    %c0_i32_0 = arith.constant 0 : i32
    %c0_i32_1 = arith.constant 0 : i32
    return %c0_i32, %c0_i32_0 : i32, i32
  }
  func.func @transform_4(%arg0: i32) -> (i32, i32) {
    %c0_i32 = arith.constant 0 : i32
    %c0_i32_0 = arith.constant 0 : i32
    %c0_i32_1 = arith.constant 0 : i32
    return %c0_i32, %c0_i32_0 : i32, i32
  }
  func.func @transform_5(%arg0: i32) -> (i32, i32) {
    %c0_i32 = arith.constant 0 : i32
    %c0_i32_0 = arith.constant 0 : i32
    return %arg0, %c0_i32 : i32, i32
  }
}

</mosaic_0001>

<bundles_post_ra>
// kernel: discriminator_forward.1
= control target key start
LH: loop header
LB: loop body
LE: loop exit
PB: predicated region body
PF: predicated region fallthrough
CT: control target
= control target key end

     0   :  { %vm90_vm0 = vcmask 130048   ;;  %vm564_vm1 = vcmask 261120   ;;  %vm966_vm2 = vcmask 64512   ;;  %s1933_s1 = inlined_call_operand.vmem [shape: f32[16,32], index: 1, kind: input, shape index: {}]   ;;  %s1934_s0 = inlined_call_operand.vmem [shape: f32[512,16], index: 0, kind: input, shape index: {}]   ;;  %s1935_s2 = inlined_call_operand.vmem [shape: f32[1,32], index: 2, kind: input, shape index: {}]   ;;  %s1936_s3 = inlined_call_operand.vmem [shape: f32[32,8], index: 3, kind: input, shape index: {}]   ;;  %s1937_s4 = inlined_call_operand.vmem [shape: f32[1,8], index: 4, kind: input, shape index: {}]   ;;  %s1938_s5 = inlined_call_operand.vmem [shape: f32[512,8], index: 5, kind: output, shape index: {}]  }
   0x1   :  { %v85_v0 = vld [vmem:[%s1933_s1 + $0x8] sm:$0xff]  ;;  %v84_v1 = vld [vmem:[%s1933_s1] sm:$0xff]  ;;  %v22_v4 = vld [vmem:[%s1934_s0 + $0x10] sm:$0xff] }
   0x2   :  { %297 = vmatpush.msra.mxu0 %v85_v0  ;;  %v20_v2 = vld [vmem:[%s1934_s0] sm:$0xff]  ;;  %1163 = vmatpush.msra.mxu3 %v85_v0  ;;  %v21_v3 = vld [vmem:[%s1934_s0 + $0x8] sm:$0xff]  ;;  %v23_v5 = vld [vmem:[%s1934_s0 + $0x18] sm:$0xff] }
   0x3   :  { %v24_v6 = vld [vmem:[%s1934_s0 + $0x20] sm:$0xff]  ;;  %v25_v7 = vld [vmem:[%s1934_s0 + $0x28] sm:$0xff]  ;;  %v26_v8 = vld [vmem:[%s1934_s0 + $0x30] sm:$0xff] }
   0x4   :  { %298 = vmatpush.msra.mxu0 %v84_v1  ;;  %1164 = vmatpush.msra.mxu3 %v84_v1  ;;  %v27_v9 = vld [vmem:[%s1934_s0 + $0x38] sm:$0xff]  ;;  %v28_v10 = vld [vmem:[%s1934_s0 + $0x40] sm:$0xff]  ;;  %v29_v11 = vld [vmem:[%s1934_s0 + $0x48] sm:$0xff] }
   0x5   :  { %1035 = vmatmul.msk.f32.vlgmr.msra.gmra.mxu0 %vm90_vm0, %v20_v2  ;;  %v30_v12 = vld [vmem:[%s1934_s0 + $0x50] sm:$0xff]  ;;  %v31_v13 = vld [vmem:[%s1934_s0 + $0x58] sm:$0xff]  ;;  %v32_v16 = vld [vmem:[%s1934_s0 + $0x60] sm:$0xff] }
   0x6   :  { %v559_v14 = vld [vmem:[%s1936_s3 + $0x18] sm:$0xff]  ;;  %v558_v15 = vld [vmem:[%s1936_s3 + $0x10] sm:$0xff]  ;;  %v557_v17 = vld [vmem:[%s1936_s3 + $0x8] sm:$0xff] }
   0x7   :  { %769 = vmatpush.msra.mxu1 %v559_v14  ;;  %1165 = vmatpush.msra.mxu2 %v559_v14  ;;  %v556_v18 = vld [vmem:[%s1936_s3] sm:$0xff]  ;;  %v33_v19 = vld [vmem:[%s1934_s0 + $0x68] sm:$0xff]  ;;  %v34_v20 = vld [vmem:[%s1934_s0 + $0x70] sm:$0xff] }
   0x8   :  { %v35_v21 = vld [vmem:[%s1934_s0 + $0x78] sm:$0xff]  ;;  %v1286_v22 = vld [vmem:[%s1935_s2] ss:$0 sm:$0xff]  ;;  %v37_v28 = vld [vmem:[%s1934_s0 + $0x88] sm:$0xff] }
   0x9   :  { %770 = vmatpush.msra.mxu1 %v558_v15  ;;  %1166 = vmatpush.msra.mxu2 %v558_v15  ;;  %v36_v24 = vld [vmem:[%s1934_s0 + $0x80] sm:$0xff]  ;;  %v38_v32 = vld [vmem:[%s1934_s0 + $0x90] sm:$0xff]  ;;  %v39_v36 = vld [vmem:[%s1934_s0 + $0x98] sm:$0xff] }
   0xa   :  { %v40_v40 = vld [vmem:[%s1934_s0 + $0xa0] sm:$0xff]  ;;  %v41_v44 = vld [vmem:[%s1934_s0 + $0xa8] sm:$0xff]  ;;  %v42_v48 = vld [vmem:[%s1934_s0 + $0xb0] sm:$0xff] }
   0xb   :  { %771 = vmatpush.msra.mxu1 %v557_v17  ;;  %1167 = vmatpush.msra.mxu2 %v557_v17  ;;  %v43_v52 = vld [vmem:[%s1934_s0 + $0xb8] sm:$0xff]  ;;  %v44_v56 = vld [vmem:[%s1934_s0 + $0xc0] sm:$0xff]  ;;  %v45_v60 = vld [vmem:[%s1934_s0 + $0xc8] sm:$0xff] }
   0xc   :  { %v46_v0 = vld [vmem:[%s1934_s0 + $0xd0] sm:$0xff] }
   0xd   :  { %1036 = vmatmul.msk.f32.gmra.mxu0 %vm90_vm0, %v21_v3  ;;  %772 = vmatpush.msra.mxu1 %v556_v18 }
   0xe   :  { %1168 = vmatpush.msra.mxu2 %v556_v18  ;;  %v50_v18 = vld [vmem:[%s1934_s0 + $0xf0] sm:$0xff] }
  0x15   :  { %1037 = vmatmul.msk.f32.gmra.mxu0 %vm90_vm0, %v22_v4  ;;  %v47_v4 = vld [vmem:[%s1934_s0 + $0xd8] sm:$0xff] }
  0x1d   :  { %1038 = vmatmul.msk.f32.gmra.mxu0 %vm90_vm0, %v23_v5 }
  0x25   :  { %1039 = vmatmul.msk.f32.gmra.mxu0 %vm90_vm0, %v24_v6 }
  0x2d   :  { %1040 = vmatmul.msk.f32.gmra.mxu0 %vm90_vm0, %v25_v7 }
  0x35   :  { %1041 = vmatmul.msk.f32.gmra.mxu0 %vm90_vm0, %v26_v8  ;;  %v48_v8 = vld [vmem:[%s1934_s0 + $0xe0] sm:$0xff] }
  0x3d   :  { %1042 = vmatmul.msk.f32.gmra.mxu0 %vm90_vm0, %v27_v9 }
  0x45   :  { %1043 = vmatmul.msk.f32.gmra.mxu0 %vm90_vm0, %v28_v10 }
  0x4d   :  { %1044 = vmatmul.msk.f32.gmra.mxu0 %vm90_vm0, %v29_v11  ;;  %v53_v11 = vld [vmem:[%s1934_s0 + $0x108] sm:$0xff] }
  0x4e   :  { %1068 = vmatmul.msk.f32.vlgmr.msra.gmra.mxu3 %vm90_vm0, %v53_v11 }
  0x55   :  { %1045 = vmatmul.msk.f32.gmra.mxu0 %vm90_vm0, %v30_v12 }
  0x5d   :  { %1046 = vmatmul.msk.f32.gmra.mxu0 %vm90_vm0, %v31_v13  ;;  %v49_v13 = vld [vmem:[%s1934_s0 + $0xe8] sm:$0xff] }
  0x65   :  { %1047 = vmatmul.msk.f32.gmra.mxu0 %vm90_vm0, %v32_v16  ;;  %v54_v16 = vld [vmem:[%s1934_s0 + $0x110] sm:$0xff] }
  0x66   :  { %1069 = vmatmul.msk.f32.gmra.mxu3 %vm90_vm0, %v54_v16 }
  0x6d   :  { %1048 = vmatmul.msk.f32.gmra.mxu0 %vm90_vm0, %v33_v19 }
  0x75   :  { %1049 = vmatmul.msk.f32.gmra.mxu0 %vm90_vm0, %v34_v20 }
  0x7d   :  { %1050 = vmatmul.msk.f32.gmra.mxu0 %vm90_vm0, %v35_v21  ;;  %v55_v21 = vld [vmem:[%s1934_s0 + $0x118] sm:$0xff] }
  0x7e   :  { %1070 = vmatmul.msk.f32.gmra.mxu3 %vm90_vm0, %v55_v21 }
  0x82   :  { %v300_v23 = vpop.f32.mrf.mxu0 }
  0x83   :  { %v301_v25 = vadd.f32 %v1286_v22, %v300_v23 }
  0x85   :  { %v492_v26 = vmax.f32 %v301_v25, 0.0  ;;  %1051 = vmatmul.msk.f32.gmra.mxu0 %vm90_vm0, %v36_v24  ;;  %v51_v24 = vld [vmem:[%s1934_s0 + $0xf8] sm:$0xff] }
  0x87   :  { %1099 = vmatmul.msk.f32.vlgmr.msra.gmra.mxu1 %vm564_vm1, %v492_v26 }
  0x8a   :  { %v303_v27 = vpop.f32.mrf.mxu0 }
  0x8b   :  { %v304_v29 = vadd.f32 %v1286_v22, %v303_v27  ;;  %v56_v27 = vld [vmem:[%s1934_s0 + $0x120] sm:$0xff] }
  0x8c   :  { %1071 = vmatmul.msk.f32.gmra.mxu3 %vm90_vm0, %v56_v27 }
  0x8d   :  { %v493_v30 = vmax.f32 %v304_v29, 0.0  ;;  %1052 = vmatmul.msk.f32.gmra.mxu0 %vm90_vm0, %v37_v28  ;;  %v1403_v28 = vld [vmem:[%s1937_s4] ss:$0 sm:$0xff] }
  0x8f   :  { %1100 = vmatmul.msk.f32.gmra.mxu1 %vm564_vm1, %v493_v30  ;;  %v52_v30 = vld [vmem:[%s1934_s0 + $0x100] sm:$0xff] }
  0x92   :  { %v306_v31 = vpop.f32.mrf.mxu0 }
  0x93   :  { %v307_v33 = vadd.f32 %v1286_v22, %v306_v31 }
  0x95   :  { %v494_v34 = vmax.f32 %v307_v33, 0.0  ;;  %1053 = vmatmul.msk.f32.gmra.mxu0 %vm90_vm0, %v38_v32 }
  0x97   :  { %1101 = vmatmul.msk.f32.gmra.mxu1 %vm564_vm1, %v494_v34 }
  0x9a   :  { %v309_v35 = vpop.f32.mrf.mxu0 }
  0x9b   :  { %v310_v37 = vadd.f32 %v1286_v22, %v309_v35  ;;  %v57_v35 = vld [vmem:[%s1934_s0 + $0x128] sm:$0xff] }
  0x9c   :  { %1072 = vmatmul.msk.f32.gmra.mxu3 %vm90_vm0, %v57_v35 }
  0x9d   :  { %v495_v38 = vmax.f32 %v310_v37, 0.0  ;;  %1054 = vmatmul.msk.f32.gmra.mxu0 %vm90_vm0, %v39_v36 }
  0x9f   :  { %1102 = vmatmul.msk.f32.gmra.mxu1 %vm564_vm1, %v495_v38 }
  0xa2   :  { %v312_v39 = vpop.f32.mrf.mxu0 }
  0xa3   :  { %v313_v41 = vadd.f32 %v1286_v22, %v312_v39 }
  0xa5   :  { %v496_v42 = vmax.f32 %v313_v41, 0.0  ;;  %1055 = vmatmul.msk.f32.gmra.mxu0 %vm90_vm0, %v40_v40  ;;  %v58_v41 = vld [vmem:[%s1934_s0 + $0x130] sm:$0xff] }
  0xa6   :  { %1073 = vmatmul.msk.f32.gmra.mxu3 %vm90_vm0, %v58_v41 }
  0xa7   :  { %1103 = vmatmul.msk.f32.gmra.mxu1 %vm564_vm1, %v496_v42 }
  0xaa   :  { %v315_v43 = vpop.f32.mrf.mxu0 }
  0xab   :  { %v316_v45 = vadd.f32 %v1286_v22, %v315_v43 }
  0xad   :  { %v497_v46 = vmax.f32 %v316_v45, 0.0  ;;  %1056 = vmatmul.msk.f32.gmra.mxu0 %vm90_vm0, %v41_v44 }
  0xaf   :  { %1104 = vmatmul.msk.f32.gmra.mxu1 %vm564_vm1, %v497_v46 }
  0xb2   :  { %v318_v47 = vpop.f32.mrf.mxu0 }
  0xb3   :  { %v319_v49 = vadd.f32 %v1286_v22, %v318_v47  ;;  %v59_v47 = vld [vmem:[%s1934_s0 + $0x138] sm:$0xff] }
  0xb4   :  { %1074 = vmatmul.msk.f32.gmra.mxu3 %vm90_vm0, %v59_v47 }
  0xb5   :  { %v498_v50 = vmax.f32 %v319_v49, 0.0  ;;  %1057 = vmatmul.msk.f32.gmra.mxu0 %vm90_vm0, %v42_v48 }
  0xb7   :  { %1105 = vmatmul.msk.f32.gmra.mxu1 %vm564_vm1, %v498_v50 }
  0xba   :  { %v321_v51 = vpop.f32.mrf.mxu0 }
  0xbb   :  { %v322_v53 = vadd.f32 %v1286_v22, %v321_v51 }
  0xbd   :  { %v499_v54 = vmax.f32 %v322_v53, 0.0  ;;  %1058 = vmatmul.msk.f32.gmra.mxu0 %vm90_vm0, %v43_v52  ;;  %v60_v53 = vld [vmem:[%s1934_s0 + $0x140] sm:$0xff] }
  0xbe   :  { %1075 = vmatmul.msk.f32.gmra.mxu3 %vm90_vm0, %v60_v53 }
  0xbf   :  { %1106 = vmatmul.msk.f32.gmra.mxu1 %vm564_vm1, %v499_v54 }
  0xc2   :  { %v324_v55 = vpop.f32.mrf.mxu0 }
  0xc3   :  { %v325_v57 = vadd.f32 %v1286_v22, %v324_v55 }
  0xc5   :  { %v500_v58 = vmax.f32 %v325_v57, 0.0  ;;  %1059 = vmatmul.msk.f32.gmra.mxu0 %vm90_vm0, %v44_v56 }
  0xc7   :  { %1107 = vmatmul.msk.f32.gmra.mxu1 %vm564_vm1, %v500_v58 }
  0xca   :  { %v327_v59 = vpop.f32.mrf.mxu0 }
  0xcb   :  { %v328_v61 = vadd.f32 %v1286_v22, %v327_v59  ;;  %v61_v59 = vld [vmem:[%s1934_s0 + $0x148] sm:$0xff] }
  0xcc   :  { %1076 = vmatmul.msk.f32.gmra.mxu3 %vm90_vm0, %v61_v59  ;;  %v71_v59 = vld [vmem:[%s1934_s0 + $0x198] sm:$0xff] }
  0xcd   :  { %v501_v62 = vmax.f32 %v328_v61, 0.0  ;;  %1060 = vmatmul.msk.f32.gmra.mxu0 %vm90_vm0, %v45_v60 }
  0xcf   :  { %1108 = vmatmul.msk.f32.gmra.mxu1 %vm564_vm1, %v501_v62 }
  0xd1   :  { %v399_v47 = vpop.f32.mrf.mxu3 }
  0xd2   :  { %v330_v63 = vpop.f32.mrf.mxu0 }
  0xd3   :  { %v331_v1 = vadd.f32 %v1286_v22, %v330_v63 }
  0xd5   :  { %v502_v2 = vmax.f32 %v331_v1, 0.0  ;;  %1061 = vmatmul.msk.f32.gmra.mxu0 %vm90_vm0, %v46_v0  ;;  %v62_v1 = vld [vmem:[%s1934_s0 + $0x150] sm:$0xff] }
  0xd6   :  { %1077 = vmatmul.msk.f32.gmra.mxu3 %vm90_vm0, %v62_v1 }
  0xd7   :  { %1109 = vmatmul.msk.f32.gmra.mxu1 %vm564_vm1, %v502_v2 }
  0xda   :  { %v333_v3 = vpop.f32.mrf.mxu0 }
  0xdb   :  { %v334_v5 = vadd.f32 %v1286_v22, %v333_v3 }
  0xdd   :  { %v503_v6 = vmax.f32 %v334_v5, 0.0  ;;  %1062 = vmatmul.msk.f32.gmra.mxu0 %vm90_vm0, %v47_v4 }
  0xdf   :  { %1110 = vmatmul.msk.f32.gmra.mxu1 %vm564_vm1, %v503_v6 }
  0xe2   :  { %v336_v7 = vpop.f32.mrf.mxu0 }
  0xe3   :  { %v337_v9 = vadd.f32 %v1286_v22, %v336_v7  ;;  %v63_v7 = vld [vmem:[%s1934_s0 + $0x158] sm:$0xff] }
  0xe4   :  { %1078 = vmatmul.msk.f32.gmra.mxu3 %vm90_vm0, %v63_v7 }
  0xe5   :  { %v504_v10 = vmax.f32 %v337_v9, 0.0  ;;  %1063 = vmatmul.msk.f32.gmra.mxu0 %vm90_vm0, %v48_v8 }
  0xe7   :  { %1111 = vmatmul.msk.f32.gmra.mxu1 %vm564_vm1, %v504_v10 }
  0xea   :  { %v339_v12 = vpop.f32.mrf.mxu0 }
  0xeb   :  { %v340_v14 = vadd.f32 %v1286_v22, %v339_v12 }
  0xed   :  { %v505_v15 = vmax.f32 %v340_v14, 0.0  ;;  %1064 = vmatmul.msk.f32.gmra.mxu0 %vm90_vm0, %v49_v13  ;;  %v64_v13 = vld [vmem:[%s1934_s0 + $0x160] sm:$0xff] }
  0xee   :  { %1079 = vmatmul.msk.f32.gmra.mxu3 %vm90_vm0, %v64_v13 }
  0xef   :  { %1112 = vmatmul.msk.f32.gmra.mxu1 %vm564_vm1, %v505_v15 }
  0xf2   :  { %v342_v17 = vpop.f32.mrf.mxu0 }
  0xf3   :  { %v343_v19 = vadd.f32 %v1286_v22, %v342_v17 }
  0xf5   :  { %v506_v20 = vmax.f32 %v343_v19, 0.0  ;;  %1065 = vmatmul.msk.f32.gmra.mxu0 %vm90_vm0, %v50_v18  ;;  %v65_v19 = vld [vmem:[%s1934_s0 + $0x168] sm:$0xff] }
  0xf6   :  { %1080 = vmatmul.msk.f32.gmra.mxu3 %vm90_vm0, %v65_v19 }
  0xf7   :  { %1113 = vmatmul.msk.f32.gmra.mxu1 %vm564_vm1, %v506_v20 }
  0xfa   :  { %v345_v23 = vpop.f32.mrf.mxu0 }
  0xfb   :  { %v346_v25 = vadd.f32 %v1286_v22, %v345_v23 }
  0xfd   :  { %v507_v26 = vmax.f32 %v346_v25, 0.0  ;;  %1066 = vmatmul.msk.f32.gmra.mxu0 %vm90_vm0, %v51_v24 }
  0xff   :  { %1114 = vmatmul.msk.f32.gmra.mxu1 %vm564_vm1, %v507_v26  ;;  %v66_v26 = vld [vmem:[%s1934_s0 + $0x170] sm:$0xff] }
 0x100   :  { %1081 = vmatmul.msk.f32.gmra.mxu3 %vm90_vm0, %v66_v26 }
 0x102   :  { %v348_v29 = vpop.f32.mrf.mxu0 }
 0x103   :  { %v349_v31 = vadd.f32 %v1286_v22, %v348_v29 }
 0x104   :  { %v774_v32 = vpop.f32.mrf.mxu1 }
 0x105   :  { %v508_v33 = vmax.f32 %v349_v31, 0.0  ;;  %v775_v34 = vadd.f32 %v1403_v28, %v774_v32  ;;  %1067 = vmatmul.msk.f32.gmra.mxu0 %vm90_vm0, %v52_v30 }
 0x107   :  { %967 = vst.msk [vmem:[%s1938_s5] sm:$0xff] %vm966_vm2, %v775_v34  ;;  %1115 = vmatmul.msk.f32.gmra.mxu1 %vm564_vm1, %v508_v33  ;;  %v67_v33 = vld [vmem:[%s1934_s0 + $0x178] sm:$0xff] }
 0x108   :  { %1082 = vmatmul.msk.f32.gmra.mxu3 %vm90_vm0, %v67_v33 }
 0x10a   :  { %v351_v36 = vpop.f32.mrf.mxu0 }
 0x10b   :  { %v352_v37 = vadd.f32 %v1286_v22, %v351_v36 }
 0x10c   :  { %v777_v38 = vpop.f32.mrf.mxu1 }
 0x10d   :  { %v509_v39 = vmax.f32 %v352_v37, 0.0  ;;  %v778_v40 = vadd.f32 %v1403_v28, %v777_v38 }
 0x10f   :  { %968 = vst.msk [vmem:[%s1938_s5 + $0x8] sm:$0xff] %vm966_vm2, %v778_v40  ;;  %1116 = vmatmul.msk.f32.gmra.mxu1 %vm564_vm1, %v509_v39  ;;  %v68_v39 = vld [vmem:[%s1934_s0 + $0x180] sm:$0xff] }
 0x110   :  { %1083 = vmatmul.msk.f32.gmra.mxu3 %vm90_vm0, %v68_v39 }
 0x112   :  { %v354_v42 = vpop.f32.mrf.mxu0 }
 0x113   :  { %v355_v43 = vadd.f32 %v1286_v22, %v354_v42 }
 0x114   :  { %v780_v44 = vpop.f32.mrf.mxu1 }
 0x115   :  { %v510_v45 = vmax.f32 %v355_v43, 0.0  ;;  %v781_v46 = vadd.f32 %v1403_v28, %v780_v44 }
 0x117   :  { %969 = vst.msk [vmem:[%s1938_s5 + $0x10] sm:$0xff] %vm966_vm2, %v781_v46  ;;  %1117 = vmatmul.msk.f32.gmra.mxu1 %vm564_vm1, %v510_v45  ;;  %v69_v45 = vld [vmem:[%s1934_s0 + $0x188] sm:$0xff] }
 0x118   :  { %1084 = vmatmul.msk.f32.gmra.mxu3 %vm90_vm0, %v69_v45 }
 0x11a   :  { %v357_v48 = vpop.f32.mrf.mxu0 }
 0x11b   :  { %v358_v49 = vadd.f32 %v1286_v22, %v357_v48 }
 0x11c   :  { %v783_v50 = vpop.f32.mrf.mxu1 }
 0x11d   :  { %v511_v51 = vmax.f32 %v358_v49, 0.0  ;;  %v784_v52 = vadd.f32 %v1403_v28, %v783_v50 }
 0x11f   :  { %970 = vst.msk [vmem:[%s1938_s5 + $0x18] sm:$0xff] %vm966_vm2, %v784_v52  ;;  %1118 = vmatmul.msk.f32.gmra.mxu1 %vm564_vm1, %v511_v51  ;;  %v70_v52 = vld [vmem:[%s1934_s0 + $0x190] sm:$0xff] }
 0x120   :  { %1085 = vmatmul.msk.f32.gmra.mxu3 %vm90_vm0, %v70_v52 }
 0x122   :  { %v360_v54 = vpop.f32.mrf.mxu0 }
 0x123   :  { %v361_v55 = vadd.f32 %v1286_v22, %v360_v54  ;;  %v402_v54 = vpop.f32.mrf.mxu3 }
 0x124   :  { %v786_v56 = vpop.f32.mrf.mxu1 }
 0x125   :  { %v512_v57 = vmax.f32 %v361_v55, 0.0  ;;  %v787_v58 = vadd.f32 %v1403_v28, %v786_v56 }
 0x127   :  { %971 = vst.msk [vmem:[%s1938_s5 + $0x20] sm:$0xff] %vm966_vm2, %v787_v58  ;;  %1119 = vmatmul.msk.f32.gmra.mxu1 %vm564_vm1, %v512_v57 }
 0x128   :  { %1086 = vmatmul.msk.f32.gmra.mxu3 %vm90_vm0, %v71_v59  ;;  %v81_v59 = vld [vmem:[%s1934_s0 + $0x1e8] sm:$0xff] }
 0x12a   :  { %v363_v60 = vpop.f32.mrf.mxu0 }
 0x12b   :  { %v364_v61 = vadd.f32 %v1286_v22, %v363_v60 }
 0x12c   :  { %v789_v62 = vpop.f32.mrf.mxu1 }
 0x12d   :  { %v513_v63 = vmax.f32 %v364_v61, 0.0  ;;  %v790_v0 = vadd.f32 %v1403_v28, %v789_v62  ;;  %v405_v61 = vpop.f32.mrf.mxu3 }
 0x12f   :  { %972 = vst.msk [vmem:[%s1938_s5 + $0x28] sm:$0xff] %vm966_vm2, %v790_v0  ;;  %1120 = vmatmul.msk.f32.gmra.mxu1 %vm564_vm1, %v513_v63 }
 0x132   :  { %v366_v2 = vpop.f32.mrf.mxu0 }
 0x133   :  { %v367_v3 = vadd.f32 %v1286_v22, %v366_v2  ;;  %v72_v2 = vld [vmem:[%s1934_s0 + $0x1a0] sm:$0xff] }
 0x134   :  { %v792_v4 = vpop.f32.mrf.mxu1  ;;  %1087 = vmatmul.msk.f32.gmra.mxu3 %vm90_vm0, %v72_v2 }
 0x135   :  { %v514_v5 = vmax.f32 %v367_v3, 0.0  ;;  %v793_v6 = vadd.f32 %v1403_v28, %v792_v4  ;;  %v408_v4 = vpop.f32.mrf.mxu3 }
 0x137   :  { %973 = vst.msk [vmem:[%s1938_s5 + $0x30] sm:$0xff] %vm966_vm2, %v793_v6  ;;  %1121 = vmatmul.msk.f32.gmra.mxu1 %vm564_vm1, %v514_v5 }
 0x13a   :  { %v369_v8 = vpop.f32.mrf.mxu0 }
 0x13b   :  { %v370_v9 = vadd.f32 %v1286_v22, %v369_v8 }
 0x13c   :  { %v795_v10 = vpop.f32.mrf.mxu1 }
 0x13d   :  { %v515_v11 = vmax.f32 %v370_v9, 0.0  ;;  %v796_v12 = vadd.f32 %v1403_v28, %v795_v10  ;;  %v73_v9 = vld [vmem:[%s1934_s0 + $0x1a8] sm:$0xff]  ;;  %v400_v10 = vadd.f32 %v1286_v22, %v399_v47  ;;  %v79_v47 = vld [vmem:[%s1934_s0 + $0x1d8] sm:$0xff] }
 0x13e   :  { %1088 = vmatmul.msk.f32.gmra.mxu3 %vm90_vm0, %v73_v9 }
 0x13f   :  { %974 = vst.msk [vmem:[%s1938_s5 + $0x38] sm:$0xff] %vm966_vm2, %v796_v12  ;;  %1122 = vmatmul.msk.f32.gmra.mxu1 %vm564_vm1, %v515_v11  ;;  %v411_v11 = vpop.f32.mrf.mxu3  ;;  %v525_v12 = vmax.f32 %v400_v10, 0.0 }
 0x142   :  { %v372_v14 = vpop.f32.mrf.mxu0 }
 0x143   :  { %v373_v15 = vadd.f32 %v1286_v22, %v372_v14 }
 0x144   :  { %v798_v16 = vpop.f32.mrf.mxu1 }
 0x145   :  { %v516_v17 = vmax.f32 %v373_v15, 0.0  ;;  %v799_v18 = vadd.f32 %v1403_v28, %v798_v16  ;;  %v74_v15 = vld [vmem:[%s1934_s0 + $0x1b0] sm:$0xff]  ;;  %v403_v16 = vadd.f32 %v1286_v22, %v402_v54 }
 0x146   :  { %1089 = vmatmul.msk.f32.gmra.mxu3 %vm90_vm0, %v74_v15 }
 0x147   :  { %975 = vst.msk [vmem:[%s1938_s5 + $0x40] sm:$0xff] %vm966_vm2, %v799_v18  ;;  %1123 = vmatmul.msk.f32.gmra.mxu1 %vm564_vm1, %v516_v17  ;;  %v414_v17 = vpop.f32.mrf.mxu3  ;;  %v526_v18 = vmax.f32 %v403_v16, 0.0 }
 0x14a   :  { %v375_v20 = vpop.f32.mrf.mxu0 }
 0x14b   :  { %v376_v21 = vadd.f32 %v1286_v22, %v375_v20 }
 0x14c   :  { %v801_v23 = vpop.f32.mrf.mxu1 }
 0x14d   :  { %v517_v24 = vmax.f32 %v376_v21, 0.0  ;;  %v802_v25 = vadd.f32 %v1403_v28, %v801_v23  ;;  %v75_v21 = vld [vmem:[%s1934_s0 + $0x1b8] sm:$0xff]  ;;  %v406_v23 = vadd.f32 %v1286_v22, %v405_v61 }
 0x14e   :  { %1090 = vmatmul.msk.f32.gmra.mxu3 %vm90_vm0, %v75_v21 }
 0x14f   :  { %976 = vst.msk [vmem:[%s1938_s5 + $0x48] sm:$0xff] %vm966_vm2, %v802_v25  ;;  %1124 = vmatmul.msk.f32.gmra.mxu1 %vm564_vm1, %v517_v24  ;;  %v417_v24 = vpop.f32.mrf.mxu3  ;;  %v527_v25 = vmax.f32 %v406_v23, 0.0 }
 0x152   :  { %v378_v27 = vpop.f32.mrf.mxu0 }
 0x153   :  { %v379_v29 = vadd.f32 %v1286_v22, %v378_v27 }
 0x154   :  { %v804_v30 = vpop.f32.mrf.mxu1 }
 0x155   :  { %v518_v31 = vmax.f32 %v379_v29, 0.0  ;;  %v805_v32 = vadd.f32 %v1403_v28, %v804_v30  ;;  %v76_v29 = vld [vmem:[%s1934_s0 + $0x1c0] sm:$0xff]  ;;  %v409_v30 = vadd.f32 %v1286_v22, %v408_v4 }
 0x156   :  { %1091 = vmatmul.msk.f32.gmra.mxu3 %vm90_vm0, %v76_v29 }
 0x157   :  { %977 = vst.msk [vmem:[%s1938_s5 + $0x50] sm:$0xff] %vm966_vm2, %v805_v32  ;;  %1125 = vmatmul.msk.f32.gmra.mxu1 %vm564_vm1, %v518_v31  ;;  %v420_v31 = vpop.f32.mrf.mxu3  ;;  %v528_v32 = vmax.f32 %v409_v30, 0.0 }
 0x158   :  { %v421_v54 = vadd.f32 %v1286_v22, %v420_v31 }
 0x15a   :  { %v381_v34 = vpop.f32.mrf.mxu0 }
 0x15b   :  { %v382_v35 = vadd.f32 %v1286_v22, %v381_v34 }
 0x15c   :  { %v807_v36 = vpop.f32.mrf.mxu1 }
 0x15d   :  { %v519_v37 = vmax.f32 %v382_v35, 0.0  ;;  %v808_v38 = vadd.f32 %v1403_v28, %v807_v36  ;;  %v77_v35 = vld [vmem:[%s1934_s0 + $0x1c8] sm:$0xff]  ;;  %v412_v36 = vadd.f32 %v1286_v22, %v411_v11 }
 0x15e   :  { %1092 = vmatmul.msk.f32.gmra.mxu3 %vm90_vm0, %v77_v35 }
 0x15f   :  { %978 = vst.msk [vmem:[%s1938_s5 + $0x58] sm:$0xff] %vm966_vm2, %v808_v38  ;;  %1126 = vmatmul.msk.f32.gmra.mxu1 %vm564_vm1, %v519_v37  ;;  %v423_v37 = vpop.f32.mrf.mxu3  ;;  %v529_v38 = vmax.f32 %v412_v36, 0.0 }
 0x162   :  { %v384_v40 = vpop.f32.mrf.mxu0 }
 0x163   :  { %v385_v41 = vadd.f32 %v1286_v22, %v384_v40 }
 0x164   :  { %v810_v42 = vpop.f32.mrf.mxu1 }
 0x165   :  { %v520_v43 = vmax.f32 %v385_v41, 0.0  ;;  %v811_v44 = vadd.f32 %v1403_v28, %v810_v42  ;;  %v78_v41 = vld [vmem:[%s1934_s0 + $0x1d0] sm:$0xff]  ;;  %v415_v42 = vadd.f32 %v1286_v22, %v414_v17 }
 0x166   :  { %1093 = vmatmul.msk.f32.gmra.mxu3 %vm90_vm0, %v78_v41 }
 0x167   :  { %979 = vst.msk [vmem:[%s1938_s5 + $0x60] sm:$0xff] %vm966_vm2, %v811_v44  ;;  %1127 = vmatmul.msk.f32.gmra.mxu1 %vm564_vm1, %v520_v43  ;;  %v426_v43 = vpop.f32.mrf.mxu3  ;;  %v530_v44 = vmax.f32 %v415_v42, 0.0 }
 0x168   :  { %v427_v2 = vadd.f32 %v1286_v22, %v426_v43 }
 0x16a   :  { %v387_v46 = vpop.f32.mrf.mxu0  ;;  %v534_v4 = vmax.f32 %v427_v2, 0.0 }
 0x16b   :  { %v388_v48 = vadd.f32 %v1286_v22, %v387_v46 }
 0x16c   :  { %v813_v49 = vpop.f32.mrf.mxu1 }
 0x16d   :  { %v521_v50 = vmax.f32 %v388_v48, 0.0  ;;  %v814_v51 = vadd.f32 %v1403_v28, %v813_v49  ;;  %v418_v48 = vadd.f32 %v1286_v22, %v417_v24 }
 0x16e   :  { %1094 = vmatmul.msk.f32.gmra.mxu3 %vm90_vm0, %v79_v47 }
 0x16f   :  { %980 = vst.msk [vmem:[%s1938_s5 + $0x68] sm:$0xff] %vm966_vm2, %v814_v51  ;;  %1128 = vmatmul.msk.f32.gmra.mxu1 %vm564_vm1, %v521_v50  ;;  %v429_v49 = vpop.f32.mrf.mxu3  ;;  %v531_v50 = vmax.f32 %v418_v48, 0.0 }
 0x172   :  { %v390_v53 = vpop.f32.mrf.mxu0 }
 0x173   :  { %v391_v55 = vadd.f32 %v1286_v22, %v390_v53  ;;  %v80_v53 = vld [vmem:[%s1934_s0 + $0x1e0] sm:$0xff] }
 0x174   :  { %v816_v56 = vpop.f32.mrf.mxu1 }
 0x175   :  { %v522_v57 = vmax.f32 %v391_v55, 0.0  ;;  %v817_v58 = vadd.f32 %v1403_v28, %v816_v56  ;;  %v532_v56 = vmax.f32 %v421_v54, 0.0 }
 0x176   :  { %1095 = vmatmul.msk.f32.gmra.mxu3 %vm90_vm0, %v80_v53 }
 0x177   :  { %981 = vst.msk [vmem:[%s1938_s5 + $0x70] sm:$0xff] %vm966_vm2, %v817_v58  ;;  %1129 = vmatmul.msk.f32.gmra.mxu1 %vm564_vm1, %v522_v57  ;;  %v432_v55 = vpop.f32.mrf.mxu3 }
 0x17a   :  { %v393_v60 = vpop.f32.mrf.mxu0 }
 0x17b   :  { %v394_v62 = vadd.f32 %v1286_v22, %v393_v60  ;;  %v424_v60 = vadd.f32 %v1286_v22, %v423_v37 }
 0x17c   :  { %v819_v63 = vpop.f32.mrf.mxu1 }
 0x17d   :  { %v523_v0 = vmax.f32 %v394_v62, 0.0  ;;  %v820_v1 = vadd.f32 %v1403_v28, %v819_v63  ;;  %v533_v62 = vmax.f32 %v424_v60, 0.0 }
 0x17e   :  { %1096 = vmatmul.msk.f32.gmra.mxu3 %vm90_vm0, %v81_v59 }
 0x17f   :  { %982 = vst.msk [vmem:[%s1938_s5 + $0x78] sm:$0xff] %vm966_vm2, %v820_v1  ;;  %1130 = vmatmul.msk.f32.gmra.mxu1 %vm564_vm1, %v523_v0  ;;  %v435_v61 = vpop.f32.mrf.mxu3  ;;  %v82_v1 = vld [vmem:[%s1934_s0 + $0x1f0] sm:$0xff] }
 0x182   :  { %v396_v3 = vpop.f32.mrf.mxu0 }
 0x183   :  { %v397_v5 = vadd.f32 %v1286_v22, %v396_v3 }
 0x184   :  { %v822_v6 = vpop.f32.mrf.mxu1 }
 0x185   :  { %v524_v7 = vmax.f32 %v397_v5, 0.0  ;;  %v823_v8 = vadd.f32 %v1403_v28, %v822_v6 }
 0x186   :  { %1097 = vmatmul.msk.f32.gmra.mxu3 %vm90_vm0, %v82_v1 }
 0x187   :  { %983 = vst.msk [vmem:[%s1938_s5 + $0x80] sm:$0xff] %vm966_vm2, %v823_v8  ;;  %1131 = vmatmul.msk.f32.vlgmr.msra.gmra.mxu2 %vm564_vm1, %v524_v7  ;;  %v438_v3 = vpop.f32.mrf.mxu3  ;;  %v83_v7 = vld [vmem:[%s1934_s0 + $0x1f8] sm:$0xff]  ;;  %v430_v8 = vadd.f32 %v1286_v22, %v429_v49 }
 0x188   :  { %v439_v24 = vadd.f32 %v1286_v22, %v438_v3 }
 0x189   :  { %v535_v10 = vmax.f32 %v430_v8, 0.0 }
 0x18c   :  { %v825_v13 = vpop.f32.mrf.mxu1 }
 0x18d   :  { %v826_v14 = vadd.f32 %v1403_v28, %v825_v13  ;;  %v433_v13 = vadd.f32 %v1286_v22, %v432_v55 }
 0x18e   :  { %1098 = vmatmul.msk.f32.gmra.mxu3 %vm90_vm0, %v83_v7 }
 0x18f   :  { %984 = vst.msk [vmem:[%s1938_s5 + $0x88] sm:$0xff] %vm966_vm2, %v826_v14  ;;  %1132 = vmatmul.msk.f32.gmra.mxu2 %vm564_vm1, %v525_v12  ;;  %v441_v9 = vpop.f32.mrf.mxu3  ;;  %v536_v15 = vmax.f32 %v433_v13, 0.0 }
 0x190   :  { %v442_v30 = vadd.f32 %v1286_v22, %v441_v9 }
 0x192   :  { %v539_v31 = vmax.f32 %v442_v30, 0.0 }
 0x194   :  { %v828_v19 = vpop.f32.mrf.mxu1 }
 0x195   :  { %v829_v20 = vadd.f32 %v1403_v28, %v828_v19 }
 0x197   :  { %985 = vst.msk [vmem:[%s1938_s5 + $0x90] sm:$0xff] %vm966_vm2, %v829_v20  ;;  %1133 = vmatmul.msk.f32.gmra.mxu2 %vm564_vm1, %v526_v18  ;;  %v444_v14 = vpop.f32.mrf.mxu3  ;;  %v436_v18 = vadd.f32 %v1286_v22, %v435_v61 }
 0x198   :  { %v445_v35 = vadd.f32 %v1286_v22, %v444_v14 }
 0x199   :  { %v537_v20 = vmax.f32 %v436_v18, 0.0 }
 0x19a   :  { %v540_v36 = vmax.f32 %v445_v35, 0.0 }
 0x19c   :  { %v831_v26 = vpop.f32.mrf.mxu1 }
 0x19d   :  { %v832_v27 = vadd.f32 %v1403_v28, %v831_v26  ;;  %v538_v26 = vmax.f32 %v439_v24, 0.0 }
 0x19f   :  { %986 = vst.msk [vmem:[%s1938_s5 + $0x98] sm:$0xff] %vm966_vm2, %v832_v27  ;;  %1134 = vmatmul.msk.f32.gmra.mxu2 %vm564_vm1, %v527_v25  ;;  %v447_v19 = vpop.f32.mrf.mxu3 }
 0x1a4   :  { %v834_v33 = vpop.f32.mrf.mxu1 }
 0x1a5   :  { %v835_v34 = vadd.f32 %v1403_v28, %v834_v33 }
 0x1a7   :  { %987 = vst.msk [vmem:[%s1938_s5 + $0xa0] sm:$0xff] %vm966_vm2, %v835_v34  ;;  %1135 = vmatmul.msk.f32.gmra.mxu2 %vm564_vm1, %v528_v32  ;;  %v450_v25 = vpop.f32.mrf.mxu3 }
 0x1a8   :  { %v451_v42 = vadd.f32 %v1286_v22, %v450_v25 }
 0x1ac   :  { %v837_v39 = vpop.f32.mrf.mxu1 }
 0x1ad   :  { %v838_v40 = vadd.f32 %v1403_v28, %v837_v39 }
 0x1af   :  { %988 = vst.msk [vmem:[%s1938_s5 + $0xa8] sm:$0xff] %vm966_vm2, %v838_v40  ;;  %1136 = vmatmul.msk.f32.gmra.mxu2 %vm564_vm1, %v529_v38  ;;  %v453_v33 = vpop.f32.mrf.mxu3  ;;  %v448_v38 = vadd.f32 %v1286_v22, %v447_v19 }
 0x1b0   :  { %v454_v47 = vadd.f32 %v1286_v22, %v453_v33 }
 0x1b1   :  { %v541_v40 = vmax.f32 %v448_v38, 0.0 }
 0x1b4   :  { %v840_v45 = vpop.f32.mrf.mxu1 }
 0x1b5   :  { %v841_v46 = vadd.f32 %v1403_v28, %v840_v45  ;;  %v542_v45 = vmax.f32 %v451_v42, 0.0 }
 0x1b7   :  { %989 = vst.msk [vmem:[%s1938_s5 + $0xb0] sm:$0xff] %vm966_vm2, %v841_v46  ;;  %1137 = vmatmul.msk.f32.gmra.mxu2 %vm564_vm1, %v530_v44  ;;  %v456_v37 = vpop.f32.mrf.mxu3 }
 0x1bc   :  { %v843_v51 = vpop.f32.mrf.mxu1 }
 0x1bd   :  { %v844_v52 = vadd.f32 %v1403_v28, %v843_v51 }
 0x1bf   :  { %990 = vst.msk [vmem:[%s1938_s5 + $0xb8] sm:$0xff] %vm966_vm2, %v844_v52  ;;  %1138 = vmatmul.msk.f32.gmra.mxu2 %vm564_vm1, %v531_v50  ;;  %v543_v50 = vmax.f32 %v454_v47, 0.0  ;;  %v457_v52 = vadd.f32 %v1286_v22, %v456_v37 }
 0x1c1   :  { %v459_v43 = vpop.f32.mrf.mxu3  ;;  %v544_v54 = vmax.f32 %v457_v52, 0.0 }
 0x1c4   :  { %v846_v57 = vpop.f32.mrf.mxu1 }
 0x1c5   :  { %v847_v58 = vadd.f32 %v1403_v28, %v846_v57  ;;  %v460_v57 = vadd.f32 %v1286_v22, %v459_v43 }
 0x1c7   :  { %991 = vst.msk [vmem:[%s1938_s5 + $0xc0] sm:$0xff] %vm966_vm2, %v847_v58  ;;  %1139 = vmatmul.msk.f32.gmra.mxu2 %vm564_vm1, %v532_v56  ;;  %v545_v59 = vmax.f32 %v460_v57, 0.0 }
 0x1c9   :  { %v462_v49 = vpop.f32.mrf.mxu3 }
 0x1cc   :  { %v849_v63 = vpop.f32.mrf.mxu1 }
 0x1cd   :  { %v850_v0 = vadd.f32 %v1403_v28, %v849_v63 }
 0x1cf   :  { %992 = vst.msk [vmem:[%s1938_s5 + $0xc8] sm:$0xff] %vm966_vm2, %v850_v0  ;;  %1140 = vmatmul.msk.f32.gmra.mxu2 %vm564_vm1, %v533_v62  ;;  %v463_v62 = vadd.f32 %v1286_v22, %v462_v49 }
 0x1d1   :  { %v465_v56 = vpop.f32.mrf.mxu3  ;;  %v546_v0 = vmax.f32 %v463_v62, 0.0 }
 0x1d2   :  { %v466_v2 = vadd.f32 %v1286_v22, %v465_v56 }
 0x1d4   :  { %v852_v5 = vpop.f32.mrf.mxu1 }
 0x1d5   :  { %v853_v6 = vadd.f32 %v1403_v28, %v852_v5  ;;  %v547_v5 = vmax.f32 %v466_v2, 0.0 }
 0x1d7   :  { %993 = vst.msk [vmem:[%s1938_s5 + $0xd0] sm:$0xff] %vm966_vm2, %v853_v6  ;;  %1141 = vmatmul.msk.f32.gmra.mxu2 %vm564_vm1, %v534_v4 }
 0x1d9   :  { %v468_v61 = vpop.f32.mrf.mxu3 }
 0x1da   :  { %v469_v7 = vadd.f32 %v1286_v22, %v468_v61 }
 0x1dc   :  { %v855_v11 = vpop.f32.mrf.mxu1 }
 0x1dd   :  { %v856_v12 = vadd.f32 %v1403_v28, %v855_v11 }
 0x1df   :  { %994 = vst.msk [vmem:[%s1938_s5 + $0xd8] sm:$0xff] %vm966_vm2, %v856_v12  ;;  %1142 = vmatmul.msk.f32.gmra.mxu2 %vm564_vm1, %v535_v10  ;;  %v548_v10 = vmax.f32 %v469_v7, 0.0 }
 0x1e1   :  { %v471_v3 = vpop.f32.mrf.mxu3 }
 0x1e2   :  { %v472_v12 = vadd.f32 %v1286_v22, %v471_v3 }
 0x1e4   :  { %v858_v16 = vpop.f32.mrf.mxu1  ;;  %v549_v14 = vmax.f32 %v472_v12, 0.0 }
 0x1e5   :  { %v859_v17 = vadd.f32 %v1403_v28, %v858_v16 }
 0x1e7   :  { %995 = vst.msk [vmem:[%s1938_s5 + $0xe0] sm:$0xff] %vm966_vm2, %v859_v17  ;;  %1143 = vmatmul.msk.f32.gmra.mxu2 %vm564_vm1, %v536_v15 }
 0x1e9   :  { %v474_v9 = vpop.f32.mrf.mxu3 }
 0x1ea   :  { %v475_v17 = vadd.f32 %v1286_v22, %v474_v9 }
 0x1ec   :  { %v861_v21 = vpop.f32.mrf.mxu1  ;;  %v550_v19 = vmax.f32 %v475_v17, 0.0 }
 0x1ed   :  { %v862_v23 = vadd.f32 %v1403_v28, %v861_v21 }
 0x1ef   :  { %996 = vst.msk [vmem:[%s1938_s5 + $0xe8] sm:$0xff] %vm966_vm2, %v862_v23  ;;  %1144 = vmatmul.msk.f32.gmra.mxu2 %vm564_vm1, %v537_v20 }
 0x1f1   :  { %v477_v16 = vpop.f32.mrf.mxu3 }
 0x1f2   :  { %v478_v23 = vadd.f32 %v1286_v22, %v477_v16 }
 0x1f4   :  { %v864_v27 = vpop.f32.mrf.mxu1  ;;  %v551_v25 = vmax.f32 %v478_v23, 0.0 }
 0x1f5   :  { %v865_v29 = vadd.f32 %v1403_v28, %v864_v27 }
 0x1f7   :  { %997 = vst.msk [vmem:[%s1938_s5 + $0xf0] sm:$0xff] %vm966_vm2, %v865_v29  ;;  %1145 = vmatmul.msk.f32.gmra.mxu2 %vm564_vm1, %v538_v26 }
 0x1f9   :  { %v480_v21 = vpop.f32.mrf.mxu3 }
 0x1fa   :  { %v481_v27 = vadd.f32 %v1286_v22, %v480_v21 }
 0x1fc   :  { %v867_v32 = vpop.f32.mrf.mxu1 }
 0x1fd   :  { %v868_v34 = vadd.f32 %v1403_v28, %v867_v32 }
 0x1ff   :  { %998 = vst.msk [vmem:[%s1938_s5 + $0xf8] sm:$0xff] %vm966_vm2, %v868_v34  ;;  %1146 = vmatmul.msk.f32.gmra.mxu2 %vm564_vm1, %v539_v31  ;;  %v552_v31 = vmax.f32 %v481_v27, 0.0 }
 0x201   :  { %v483_v29 = vpop.f32.mrf.mxu3 }
 0x202   :  { %v484_v33 = vadd.f32 %v1286_v22, %v483_v29 }
 0x207   :  { %1147 = vmatmul.msk.f32.gmra.mxu2 %vm564_vm1, %v540_v36  ;;  %v553_v36 = vmax.f32 %v484_v33, 0.0 }
 0x209   :  { %v486_v35 = vpop.f32.mrf.mxu3 }
 0x20a   :  { %v870_v39 = vpop.f32.mrf.mxu2  ;;  %v487_v38 = vadd.f32 %v1286_v22, %v486_v35 }
 0x20b   :  { %v871_v41 = vadd.f32 %v1403_v28, %v870_v39 }
 0x20d   :  { %999 = vst.msk [vmem:[%s1938_s5 + $0x100] sm:$0xff] %vm966_vm2, %v871_v41 }
 0x20f   :  { %1148 = vmatmul.msk.f32.gmra.mxu2 %vm564_vm1, %v541_v40  ;;  %v554_v40 = vmax.f32 %v487_v38, 0.0 }
 0x211   :  { %v489_v42 = vpop.f32.mrf.mxu3 }
 0x212   :  { %v873_v44 = vpop.f32.mrf.mxu2  ;;  %v490_v43 = vadd.f32 %v1286_v22, %v489_v42 }
 0x213   :  { %v874_v46 = vadd.f32 %v1403_v28, %v873_v44 }
 0x215   :  { %1000 = vst.msk [vmem:[%s1938_s5 + $0x108] sm:$0xff] %vm966_vm2, %v874_v46 }
 0x217   :  { %1149 = vmatmul.msk.f32.gmra.mxu2 %vm564_vm1, %v542_v45  ;;  %v555_v45 = vmax.f32 %v490_v43, 0.0 }
 0x21a   :  { %v876_v48 = vpop.f32.mrf.mxu2 }
 0x21b   :  { %v877_v51 = vadd.f32 %v1403_v28, %v876_v48 }
 0x21d   :  { %1001 = vst.msk [vmem:[%s1938_s5 + $0x110] sm:$0xff] %vm966_vm2, %v877_v51 }
 0x21f   :  { %1150 = vmatmul.msk.f32.gmra.mxu2 %vm564_vm1, %v543_v50 }
 0x222   :  { %v879_v53 = vpop.f32.mrf.mxu2 }
 0x223   :  { %v880_v55 = vadd.f32 %v1403_v28, %v879_v53 }
 0x225   :  { %1002 = vst.msk [vmem:[%s1938_s5 + $0x118] sm:$0xff] %vm966_vm2, %v880_v55 }
 0x227   :  { %1151 = vmatmul.msk.f32.gmra.mxu2 %vm564_vm1, %v544_v54 }
 0x22a   :  { %v882_v58 = vpop.f32.mrf.mxu2 }
 0x22b   :  { %v883_v60 = vadd.f32 %v1403_v28, %v882_v58 }
 0x22d   :  { %1003 = vst.msk [vmem:[%s1938_s5 + $0x120] sm:$0xff] %vm966_vm2, %v883_v60 }
 0x22f   :  { %1152 = vmatmul.msk.f32.gmra.mxu2 %vm564_vm1, %v545_v59 }
 0x232   :  { %v885_v63 = vpop.f32.mrf.mxu2 }
 0x233   :  { %v886_v1 = vadd.f32 %v1403_v28, %v885_v63 }
 0x235   :  { %1004 = vst.msk [vmem:[%s1938_s5 + $0x128] sm:$0xff] %vm966_vm2, %v886_v1 }
 0x237   :  { %1153 = vmatmul.msk.f32.gmra.mxu2 %vm564_vm1, %v546_v0 }
 0x23a   :  { %v888_v4 = vpop.f32.mrf.mxu2 }
 0x23b   :  { %v889_v6 = vadd.f32 %v1403_v28, %v888_v4 }
 0x23d   :  { %1005 = vst.msk [vmem:[%s1938_s5 + $0x130] sm:$0xff] %vm966_vm2, %v889_v6 }
 0x23f   :  { %1154 = vmatmul.msk.f32.gmra.mxu2 %vm564_vm1, %v547_v5 }
 0x242   :  { %v891_v8 = vpop.f32.mrf.mxu2 }
 0x243   :  { %v892_v11 = vadd.f32 %v1403_v28, %v891_v8 }
 0x245   :  { %1006 = vst.msk [vmem:[%s1938_s5 + $0x138] sm:$0xff] %vm966_vm2, %v892_v11 }
 0x247   :  { %1155 = vmatmul.msk.f32.gmra.mxu2 %vm564_vm1, %v548_v10 }
 0x24a   :  { %v894_v13 = vpop.f32.mrf.mxu2 }
 0x24b   :  { %v895_v15 = vadd.f32 %v1403_v28, %v894_v13 }
 0x24d   :  { %1007 = vst.msk [vmem:[%s1938_s5 + $0x140] sm:$0xff] %vm966_vm2, %v895_v15 }
 0x24f   :  { %1156 = vmatmul.msk.f32.gmra.mxu2 %vm564_vm1, %v549_v14 }
 0x252   :  { %v897_v18 = vpop.f32.mrf.mxu2 }
 0x253   :  { %v898_v20 = vadd.f32 %v1403_v28, %v897_v18 }
 0x255   :  { %1008 = vst.msk [vmem:[%s1938_s5 + $0x148] sm:$0xff] %vm966_vm2, %v898_v20 }
 0x257   :  { %1157 = vmatmul.msk.f32.gmra.mxu2 %vm564_vm1, %v550_v19 }
 0x25a   :  { %v900_v24 = vpop.f32.mrf.mxu2 }
 0x25b   :  { %v901_v26 = vadd.f32 %v1403_v28, %v900_v24 }
 0x25d   :  { %1009 = vst.msk [vmem:[%s1938_s5 + $0x150] sm:$0xff] %vm966_vm2, %v901_v26 }
 0x25f   :  { %1158 = vmatmul.msk.f32.gmra.mxu2 %vm564_vm1, %v551_v25 }
 0x262   :  { %v903_v30 = vpop.f32.mrf.mxu2 }
 0x263   :  { %v904_v32 = vadd.f32 %v1403_v28, %v903_v30 }
 0x265   :  { %1010 = vst.msk [vmem:[%s1938_s5 + $0x158] sm:$0xff] %vm966_vm2, %v904_v32 }
 0x267   :  { %1159 = vmatmul.msk.f32.gmra.mxu2 %vm564_vm1, %v552_v31 }
 0x26a   :  { %v906_v34 = vpop.f32.mrf.mxu2 }
 0x26b   :  { %v907_v37 = vadd.f32 %v1403_v28, %v906_v34 }
 0x26d   :  { %1011 = vst.msk [vmem:[%s1938_s5 + $0x160] sm:$0xff] %vm966_vm2, %v907_v37 }
 0x26f   :  { %1160 = vmatmul.msk.f32.gmra.mxu2 %vm564_vm1, %v553_v36 }
 0x272   :  { %v909_v39 = vpop.f32.mrf.mxu2 }
 0x273   :  { %v910_v41 = vadd.f32 %v1403_v28, %v909_v39 }
 0x275   :  { %1012 = vst.msk [vmem:[%s1938_s5 + $0x168] sm:$0xff] %vm966_vm2, %v910_v41 }
 0x277   :  { %1161 = vmatmul.msk.f32.gmra.mxu2 %vm564_vm1, %v554_v40 }
 0x27a   :  { %v912_v44 = vpop.f32.mrf.mxu2 }
 0x27b   :  { %v913_v46 = vadd.f32 %v1403_v28, %v912_v44 }
 0x27d   :  { %1013 = vst.msk [vmem:[%s1938_s5 + $0x170] sm:$0xff] %vm966_vm2, %v913_v46 }
 0x27f   :  { %1162 = vmatmul.msk.f32.gmra.mxu2 %vm564_vm1, %v555_v45 }
 0x282   :  { %v915_v47 = vpop.f32.mrf.mxu2 }
 0x283   :  { %v916_v48 = vadd.f32 %v1403_v28, %v915_v47 }
 0x285   :  { %1014 = vst.msk [vmem:[%s1938_s5 + $0x178] sm:$0xff] %vm966_vm2, %v916_v48 }
 0x28a   :  { %v918_v22 = vpop.f32.mrf.mxu2 }
 0x28b   :  { %v919_v49 = vadd.f32 %v1403_v28, %v918_v22 }
 0x28d   :  { %1015 = vst.msk [vmem:[%s1938_s5 + $0x180] sm:$0xff] %vm966_vm2, %v919_v49 }
 0x292   :  { %v921_v50 = vpop.f32.mrf.mxu2 }
 0x293   :  { %v922_v51 = vadd.f32 %v1403_v28, %v921_v50 }
 0x295   :  { %1016 = vst.msk [vmem:[%s1938_s5 + $0x188] sm:$0xff] %vm966_vm2, %v922_v51 }
 0x29a   :  { %v924_v52 = vpop.f32.mrf.mxu2 }
 0x29b   :  { %v925_v53 = vadd.f32 %v1403_v28, %v924_v52 }
 0x29d   :  { %1017 = vst.msk [vmem:[%s1938_s5 + $0x190] sm:$0xff] %vm966_vm2, %v925_v53 }
 0x2a2   :  { %v927_v54 = vpop.f32.mrf.mxu2 }
 0x2a3   :  { %v928_v55 = vadd.f32 %v1403_v28, %v927_v54 }
 0x2a5   :  { %1018 = vst.msk [vmem:[%s1938_s5 + $0x198] sm:$0xff] %vm966_vm2, %v928_v55 }
 0x2aa   :  { %v930_v56 = vpop.f32.mrf.mxu2 }
 0x2ab   :  { %v931_v57 = vadd.f32 %v1403_v28, %v930_v56 }
 0x2ad   :  { %1019 = vst.msk [vmem:[%s1938_s5 + $0x1a0] sm:$0xff] %vm966_vm2, %v931_v57 }
 0x2b2   :  { %v933_v58 = vpop.f32.mrf.mxu2 }
 0x2b3   :  { %v934_v59 = vadd.f32 %v1403_v28, %v933_v58 }
 0x2b5   :  { %1020 = vst.msk [vmem:[%s1938_s5 + $0x1a8] sm:$0xff] %vm966_vm2, %v934_v59 }
 0x2ba   :  { %v936_v60 = vpop.f32.mrf.mxu2 }
 0x2bb   :  { %v937_v61 = vadd.f32 %v1403_v28, %v936_v60 }
 0x2bd   :  { %1021 = vst.msk [vmem:[%s1938_s5 + $0x1b0] sm:$0xff] %vm966_vm2, %v937_v61 }
 0x2c2   :  { %v939_v62 = vpop.f32.mrf.mxu2 }
 0x2c3   :  { %v940_v63 = vadd.f32 %v1403_v28, %v939_v62 }
 0x2c5   :  { %1022 = vst.msk [vmem:[%s1938_s5 + $0x1b8] sm:$0xff] %vm966_vm2, %v940_v63 }
 0x2ca   :  { %v942_v0 = vpop.f32.mrf.mxu2 }
 0x2cb   :  { %v943_v1 = vadd.f32 %v1403_v28, %v942_v0 }
 0x2cd   :  { %1023 = vst.msk [vmem:[%s1938_s5 + $0x1c0] sm:$0xff] %vm966_vm2, %v943_v1 }
 0x2d2   :  { %v945_v2 = vpop.f32.mrf.mxu2 }
 0x2d3   :  { %v946_v3 = vadd.f32 %v1403_v28, %v945_v2 }
 0x2d5   :  { %1024 = vst.msk [vmem:[%s1938_s5 + $0x1c8] sm:$0xff] %vm966_vm2, %v946_v3 }
 0x2da   :  { %v948_v4 = vpop.f32.mrf.mxu2 }
 0x2db   :  { %v949_v5 = vadd.f32 %v1403_v28, %v948_v4 }
 0x2dd   :  { %1025 = vst.msk [vmem:[%s1938_s5 + $0x1d0] sm:$0xff] %vm966_vm2, %v949_v5 }
 0x2e2   :  { %v951_v6 = vpop.f32.mrf.mxu2 }
 0x2e3   :  { %v952_v7 = vadd.f32 %v1403_v28, %v951_v6 }
 0x2e5   :  { %1026 = vst.msk [vmem:[%s1938_s5 + $0x1d8] sm:$0xff] %vm966_vm2, %v952_v7 }
 0x2ea   :  { %v954_v8 = vpop.f32.mrf.mxu2 }
 0x2eb   :  { %v955_v9 = vadd.f32 %v1403_v28, %v954_v8 }
 0x2ed   :  { %1027 = vst.msk [vmem:[%s1938_s5 + $0x1e0] sm:$0xff] %vm966_vm2, %v955_v9 }
 0x2f2   :  { %v957_v10 = vpop.f32.mrf.mxu2 }
 0x2f3   :  { %v958_v11 = vadd.f32 %v1403_v28, %v957_v10 }
 0x2f5   :  { %1028 = vst.msk [vmem:[%s1938_s5 + $0x1e8] sm:$0xff] %vm966_vm2, %v958_v11 }
 0x2fa   :  { %v960_v12 = vpop.f32.mrf.mxu2 }
 0x2fb   :  { %v961_v13 = vadd.f32 %v1403_v28, %v960_v12 }
 0x2fd   :  { %1029 = vst.msk [vmem:[%s1938_s5 + $0x1f0] sm:$0xff] %vm966_vm2, %v961_v13 }
 0x302   :  { %v963_v14 = vpop.f32.mrf.mxu2 }
 0x303   :  { %v964_v15 = vadd.f32 %v1403_v28, %v963_v14 }
 0x305   :  { %1030 = vst.msk [vmem:[%s1938_s5 + $0x1f8] sm:$0xff] %vm966_vm2, %v964_v15 }

</bundles_post_ra>
